<compile_context>
chip_gen: v7x
topology: tpu7x:2x2x1
jax: 0.10.0
libtpu: 0.0.40
codegen_flags: <defaults>
</compile_context>

<pallas_src>
import jax
import jax.numpy as jnp
from jax.experimental import pallas as pl
from jax.experimental.pallas import tpu as pltpu


# ----------------------------- Pallas kernel ------------------------------- #
def _mlp_kernel(x_ref, *refs):
    """refs = (w0, b0, w1, b1, ..., w_{L-1}, b_{L-1}, w_out, b_out, out_ref)."""
    out_ref = refs[-1]
    wrefs = refs[:-1]
    num_hidden_layers = (len(wrefs) - 2) // 2

    h = x_ref[...]                                  # f32 activations tile
    for i in range(num_hidden_layers):              # static unroll
        w = wrefs[2 * i][...]                       # [d_in, H]  bf16 (matmul dtype)
        b = wrefs[2 * i + 1][...]                   # [1, H]     f32
        h = jnp.dot(h.astype(w.dtype), w,
                    preferred_element_type=jnp.float32) + b
        h = jnp.maximum(h, 0.0)                     # ReLU in f32 on the VPU
        # Dropout(p=0) and LayerNorm->Identity are no-ops in forward().

    wo = wrefs[-2][...]                             # [H, out_dim]  bf16
    bo = wrefs[-1][...]                             # [1, out_dim]  f32
    out_ref[...] = (jnp.dot(h.astype(wo.dtype), wo,
                            preferred_element_type=jnp.float32)
                    + bo).astype(out_ref.dtype)     # single [tb, out_dim] store


# ------------------------------ wrapper ------------------------------------ #
def prediction_mlp_forward(params, x, *, block_b=512):
    """Fused PredictionMLP forward. x: [B, input_dim] (f32) -> [B, output_dim] (f32).

    `params` should come from prepare_params() so weights are already in the MXU
    dtype (no per-call convert pass over the weights).
    """
    B, input_dim = x.shape
    w_hidden, b_hidden = params["w_hidden"], params["b_hidden"]
    w_out, b_out = params["w_out"], params["b_out"]
    num_hidden_layers = len(w_hidden)
    hidden_dim = w_hidden[0].shape[1]
    out_dim = w_out.shape[1]

    # Batch tile: multiple of 16 (bf16 sublane packing) unless it covers all of B.
    tb = min(block_b, B)
    if tb < B:
        tb = max(16, (tb // 16) * 16)
    # Ensure >= 2 grid steps when B allows, so both v7x TensorCores get work
    # (no-op on single-TC v5e/v6e).
    if pl.cdiv(B, tb) < 2 and B >= 32:
        tb = ((pl.cdiv(B, 2) + 15) // 16) * 16
    grid = (pl.cdiv(B, tb),)

    # x stays f32 here; the in-kernel astype does the bf16 cast per tile.
    args = [x] + [a for w, b in zip(w_hidden, b_hidden) for a in (w, b)] + [w_out, b_out]

    const_idx = lambda i: (0, 0)                    # weights: same block every step
    x_spec = pl.BlockSpec((tb, input_dim), lambda i: (i, 0))
    out_spec = pl.BlockSpec((tb, out_dim), lambda i: (i, 0))

    flops = 2 * B * (input_dim * hidden_dim
                     + max(num_hidden_layers - 1, 0) * hidden_dim * hidden_dim
                     + hidden_dim * out_dim)
    bytes_accessed = (sum(int(a.size) * a.dtype.itemsize for a in args)
                      + B * out_dim * 4)
    cost = pl.CostEstimate(flops=flops, transcendentals=0,
                           bytes_accessed=bytes_accessed)

    weight_bytes = sum(int(a.size) * a.dtype.itemsize for a in args[1:])
    tile_bytes = 2 * (tb * input_dim * x.dtype.itemsize + tb * out_dim * 4)
    h_bytes = tb * max(input_dim, hidden_dim) * 4

    def call(single_buffer_weights: bool):
        wkwargs = ({"pipeline_mode": pl.Buffered(1)} if single_buffer_weights else {})
        in_specs = [x_spec] + [pl.BlockSpec(a.shape, const_idx, **wkwargs)
                               for a in args[1:]]
        n_bufs = 1 if single_buffer_weights else 2
        vmem_limit = int(min(max(n_bufs * weight_bytes + tile_bytes + 4 * h_bytes
                                 + (2 << 20), 16 << 20), 64 << 20))
        return pl.pallas_call(
            _mlp_kernel,
            out_shape=jax.ShapeDtypeStruct((B, out_dim), jnp.float32),
            grid=grid,
            in_specs=in_specs,
            out_specs=out_spec,
            compiler_params=pltpu.CompilerParams(
                dimension_semantics=("parallel",),
                vmem_limit_bytes=vmem_limit),
            cost_estimate=cost,
        )(*args)

    try:
        return call(True)
    except Exception:
        # Fallback: this jax/Mosaic version rejected single-buffered constant specs;
        # default double-buffering is correct, just uses 2x weight VMEM.
        return call(False)


# ----------------------- parameters & one-time prep ------------------------ #
def init_params(key, input_dim, output_dim, hidden_dim, num_hidden_layers):
    keys = jax.random.split(key, 2 * (num_hidden_layers + 1))
    s = 0.1
    w_hidden, b_hidden = [], []
    d_in = input_dim
    for i in range(num_hidden_layers):
        w_hidden.append(s * jax.random.normal(keys[2 * i], (d_in, hidden_dim), jnp.float32))
        b_hidden.append(s * jax.random.normal(keys[2 * i + 1], (1, hidden_dim), jnp.float32))
        d_in = hidden_dim
    w_out = s * jax.random.normal(keys[-2], (hidden_dim, output_dim), jnp.float32)
    b_out = s * jax.random.normal(keys[-1], (1, output_dim), jnp.float32)
    return {"w_hidden": w_hidden, "b_hidden": b_hidden,
            "w_out": w_out, "b_out": b_out}


def prepare_params(params, matmul_dtype=jnp.bfloat16):
    """Cast weights to the MXU dtype ONCE (not every forward call); biases stay f32."""
    # TODO(synk): on v7x an fp8 weight path (per-channel scale folded into the f32
    # bias/epilogue) would halve weight VMEM/DMA again if accuracy permits.
    return {
        "w_hidden": [w.astype(matmul_dtype) for w in params["w_hidden"]],
        "b_hidden": [b.astype(jnp.float32) for b in params["b_hidden"]],
        "w_out": params["w_out"].astype(matmul_dtype),
        "b_out": params["b_out"].astype(jnp.float32),
    }


# ------------------------------ reference ---------------------------------- #
def reference_mlp(params, x):
    """Pure-JAX reference with the same mixed-precision policy as the kernel."""
    h = x
    for w, b in zip(params["w_hidden"], params["b_hidden"]):
        h = jnp.maximum(
            jnp.dot(h.astype(w.dtype), w, preferred_element_type=jnp.float32) + b, 0.0)
    wo, bo = params["w_out"], params["b_out"]
    return jnp.dot(h.astype(wo.dtype), wo, preferred_element_type=jnp.float32) + bo


# --------------------------------- main ------------------------------------ #
if __name__ == "__main__":
    key = jax.random.PRNGKey(0)

    # Small shapes consistent with the module (pred_hidden_dim default = 128).
    batch = 32
    input_dim = 32
    hidden_dim = 128
    output_dim = 2
    num_hidden_layers = 3

    kx, kp = jax.random.split(key)
    x = jax.random.normal(kx, (batch, input_dim), jnp.float32)
    params = prepare_params(init_params(kp, input_dim, output_dim,
                                        hidden_dim, num_hidden_layers))

    # Default block_b; with B=32 the wrapper picks tb=16 -> grid=(2,), exercising
    # the batch pipeline and the 2-TensorCore split on v7x.
    out = prediction_mlp_forward(params, x)
    jax.block_until_ready(out)

    ref = reference_mlp(params, x)
    assert out.shape == (batch, output_dim)
    assert jnp.allclose(out, ref, atol=2e-3, rtol=2e-3), \
        float(jnp.max(jnp.abs(out - ref)))

    print("KERNEL_OK")
</pallas_src>

<mosaic_0001>
module attributes {stable_mosaic.version = 11 : i64} {
  func.func @_mlp_kernel(%arg0: i32, %arg1: memref<16x32xf32, #tpu.memory_space<vmem>>, %arg2: memref<32x128xbf16, #tpu.memory_space<vmem>>, %arg3: memref<1x128xf32, #tpu.memory_space<vmem>>, %arg4: memref<128x128xbf16, #tpu.memory_space<vmem>>, %arg5: memref<1x128xf32, #tpu.memory_space<vmem>>, %arg6: memref<128x128xbf16, #tpu.memory_space<vmem>>, %arg7: memref<1x128xf32, #tpu.memory_space<vmem>>, %arg8: memref<128x2xbf16, #tpu.memory_space<vmem>>, %arg9: memref<1x2xf32, #tpu.memory_space<vmem>>, %arg10: memref<16x2xf32, #tpu.memory_space<vmem>>) attributes {dimension_semantics = [#tpu.dimension_semantics<parallel>], iteration_bounds = array<i64: 2>, scalar_prefetch = 0 : i64, scratch_operands = 0 : i64, tpu.core_type = #tpu.core_type<tc>, window_params = [{transform_indices = @transform_0, window_bounds = array<i64: 16, 32>}, {pipeline_mode = #tpu.pipeline_mode<synchronous>, transform_indices = @transform_1, window_bounds = array<i64: 32, 128>}, {pipeline_mode = #tpu.pipeline_mode<synchronous>, transform_indices = @transform_2, window_bounds = array<i64: 1, 128>}, {pipeline_mode = #tpu.pipeline_mode<synchronous>, transform_indices = @transform_3, window_bounds = array<i64: 128, 128>}, {pipeline_mode = #tpu.pipeline_mode<synchronous>, transform_indices = @transform_4, window_bounds = array<i64: 1, 128>}, {pipeline_mode = #tpu.pipeline_mode<synchronous>, transform_indices = @transform_5, window_bounds = array<i64: 128, 128>}, {pipeline_mode = #tpu.pipeline_mode<synchronous>, transform_indices = @transform_6, window_bounds = array<i64: 1, 128>}, {pipeline_mode = #tpu.pipeline_mode<synchronous>, transform_indices = @transform_7, window_bounds = array<i64: 128, 2>}, {pipeline_mode = #tpu.pipeline_mode<synchronous>, transform_indices = @transform_8, window_bounds = array<i64: 1, 2>}, {transform_indices = @transform_9, window_bounds = array<i64: 16, 2>}]} {
    %c0 = arith.constant 0 : index
    %c0_0 = arith.constant 0 : index
    %0 = vector.load %arg1[%c0, %c0_0] : memref<16x32xf32, #tpu.memory_space<vmem>>, vector<16x32xf32>
    %c0_1 = arith.constant 0 : index
    %c0_2 = arith.constant 0 : index
    %1 = vector.load %arg2[%c0_1, %c0_2] : memref<32x128xbf16, #tpu.memory_space<vmem>>, vector<32x128xbf16>
    %c0_3 = arith.constant 0 : index
    %c0_4 = arith.constant 0 : index
    %2 = vector.load %arg3[%c0_3, %c0_4] : memref<1x128xf32, #tpu.memory_space<vmem>>, vector<1x128xf32>
    %3 = arith.truncf %0 : vector<16x32xf32> to vector<16x32xbf16>
    %cst = arith.constant dense<0.000000e+00> : vector<16x128xf32>
    %4 = tpu.matmul %3, %1, %cst {dimension_numbers = #tpu.dot_dimension_numbers<[1], [0], [0], [1], [0, 0, 1, 1], [], []>} : vector<16x32xbf16>, vector<32x128xbf16>, vector<16x128xf32> -> vector<16x128xf32>
    %5 = vector.broadcast %2 : vector<1x128xf32> to vector<16x128xf32>
    %6 = arith.addf %4, %5 : vector<16x128xf32>
    %cst_5 = arith.constant 0.000000e+00 : f32
    %7 = vector.broadcast %cst_5 : f32 to vector<16x128xf32>
    %8 = arith.maximumf %6, %7 : vector<16x128xf32>
    %c0_6 = arith.constant 0 : index
    %c0_7 = arith.constant 0 : index
    %9 = vector.load %arg4[%c0_6, %c0_7] : memref<128x128xbf16, #tpu.memory_space<vmem>>, vector<128x128xbf16>
    %c0_8 = arith.constant 0 : index
    %c0_9 = arith.constant 0 : index
    %10 = vector.load %arg5[%c0_8, %c0_9] : memref<1x128xf32, #tpu.memory_space<vmem>>, vector<1x128xf32>
    %11 = arith.truncf %8 : vector<16x128xf32> to vector<16x128xbf16>
    %cst_10 = arith.constant dense<0.000000e+00> : vector<16x128xf32>
    %12 = tpu.matmul %11, %9, %cst_10 {dimension_numbers = #tpu.dot_dimension_numbers<[1], [0], [0], [1], [0, 0, 1, 1], [], []>} : vector<16x128xbf16>, vector<128x128xbf16>, vector<16x128xf32> -> vector<16x128xf32>
    %13 = vector.broadcast %10 : vector<1x128xf32> to vector<16x128xf32>
    %14 = arith.addf %12, %13 : vector<16x128xf32>
    %cst_11 = arith.constant 0.000000e+00 : f32
    %15 = vector.broadcast %cst_11 : f32 to vector<16x128xf32>
    %16 = arith.maximumf %14, %15 : vector<16x128xf32>
    %c0_12 = arith.constant 0 : index
    %c0_13 = arith.constant 0 : index
    %17 = vector.load %arg6[%c0_12, %c0_13] : memref<128x128xbf16, #tpu.memory_space<vmem>>, vector<128x128xbf16>
    %c0_14 = arith.constant 0 : index
    %c0_15 = arith.constant 0 : index
    %18 = vector.load %arg7[%c0_14, %c0_15] : memref<1x128xf32, #tpu.memory_space<vmem>>, vector<1x128xf32>
    %19 = arith.truncf %16 : vector<16x128xf32> to vector<16x128xbf16>
    %cst_16 = arith.constant dense<0.000000e+00> : vector<16x128xf32>
    %20 = tpu.matmul %19, %17, %cst_16 {dimension_numbers = #tpu.dot_dimension_numbers<[1], [0], [0], [1], [0, 0, 1, 1], [], []>} : vector<16x128xbf16>, vector<128x128xbf16>, vector<16x128xf32> -> vector<16x128xf32>
    %21 = vector.broadcast %18 : vector<1x128xf32> to vector<16x128xf32>
    %22 = arith.addf %20, %21 : vector<16x128xf32>
    %cst_17 = arith.constant 0.000000e+00 : f32
    %23 = vector.broadcast %cst_17 : f32 to vector<16x128xf32>
    %24 = arith.maximumf %22, %23 : vector<16x128xf32>
    %c0_18 = arith.constant 0 : index
    %c0_19 = arith.constant 0 : index
    %25 = vector.load %arg8[%c0_18, %c0_19] : memref<128x2xbf16, #tpu.memory_space<vmem>>, vector<128x2xbf16>
    %c0_20 = arith.constant 0 : index
    %c0_21 = arith.constant 0 : index
    %26 = vector.load %arg9[%c0_20, %c0_21] : memref<1x2xf32, #tpu.memory_space<vmem>>, vector<1x2xf32>
    %27 = arith.truncf %24 : vector<16x128xf32> to vector<16x128xbf16>
    %cst_22 = arith.constant dense<0.000000e+00> : vector<16x2xf32>
    %28 = tpu.matmul %27, %25, %cst_22 {dimension_numbers = #tpu.dot_dimension_numbers<[1], [0], [0], [1], [0, 0, 1, 1], [], []>} : vector<16x128xbf16>, vector<128x2xbf16>, vector<16x2xf32> -> vector<16x2xf32>
    %29 = vector.broadcast %26 : vector<1x2xf32> to vector<16x2xf32>
    %30 = arith.addf %28, %29 : vector<16x2xf32>
    %c0_23 = arith.constant 0 : index
    %c0_24 = arith.constant 0 : index
    %31 = vector.load %arg10[%c0_23, %c0_24] : memref<16x2xf32, #tpu.memory_space<vmem>>, vector<16x2xf32>
    tpu.vector_store %arg10[%c0_23, %c0_24], %30 {strides = array<i32>} : memref<16x2xf32, #tpu.memory_space<vmem>>, vector<16x2xf32>,
    return
  }
  func.func @transform_0(%arg0: i32) -> (i32, i32) {
    %c0_i32 = arith.constant 0 : i32
    %c0_i32_0 = arith.constant 0 : i32
    return %arg0, %c0_i32 : i32, i32
  }
  func.func @transform_1(%arg0: i32) -> (i32, i32) {
    %c0_i32 = arith.constant 0 : i32
    %c0_i32_0 = arith.constant 0 : i32
    %c0_i32_1 = arith.constant 0 : i32
    return %c0_i32, %c0_i32_0 : i32, i32
  }
  func.func @transform_2(%arg0: i32) -> (i32, i32) {
    %c0_i32 = arith.constant 0 : i32
    %c0_i32_0 = arith.constant 0 : i32
    %c0_i32_1 = arith.constant 0 : i32
    return %c0_i32, %c0_i32_0 : i32, i32
  }
  func.func @transform_3(%arg0: i32) -> (i32, i32) {
    %c0_i32 = arith.constant 0 : i32
    %c0_i32_0 = arith.constant 0 : i32
    %c0_i32_1 = arith.constant 0 : i32
    return %c0_i32, %c0_i32_0 : i32, i32
  }
  func.func @transform_4(%arg0: i32) -> (i32, i32) {
    %c0_i32 = arith.constant 0 : i32
    %c0_i32_0 = arith.constant 0 : i32
    %c0_i32_1 = arith.constant 0 : i32
    return %c0_i32, %c0_i32_0 : i32, i32
  }
  func.func @transform_5(%arg0: i32) -> (i32, i32) {
    %c0_i32 = arith.constant 0 : i32
    %c0_i32_0 = arith.constant 0 : i32
    %c0_i32_1 = arith.constant 0 : i32
    return %c0_i32, %c0_i32_0 : i32, i32
  }
  func.func @transform_6(%arg0: i32) -> (i32, i32) {
    %c0_i32 = arith.constant 0 : i32
    %c0_i32_0 = arith.constant 0 : i32
    %c0_i32_1 = arith.constant 0 : i32
    return %c0_i32, %c0_i32_0 : i32, i32
  }
  func.func @transform_7(%arg0: i32) -> (i32, i32) {
    %c0_i32 = arith.constant 0 : i32
    %c0_i32_0 = arith.constant 0 : i32
    %c0_i32_1 = arith.constant 0 : i32
    return %c0_i32, %c0_i32_0 : i32, i32
  }
  func.func @transform_8(%arg0: i32) -> (i32, i32) {
    %c0_i32 = arith.constant 0 : i32
    %c0_i32_0 = arith.constant 0 : i32
    %c0_i32_1 = arith.constant 0 : i32
    return %c0_i32, %c0_i32_0 : i32, i32
  }
  func.func @transform_9(%arg0: i32) -> (i32, i32) {
    %c0_i32 = arith.constant 0 : i32
    %c0_i32_0 = arith.constant 0 : i32
    return %arg0, %c0_i32 : i32, i32
  }
}

module attributes {stable_mosaic.version = 11 : i64} {
  func.func @_mlp_kernel(%arg0: i32, %arg1: memref<16x32xf32, #tpu.memory_space<vmem>>, %arg2: memref<32x128xbf16, #tpu.memory_space<vmem>>, %arg3: memref<1x128xf32, #tpu.memory_space<vmem>>, %arg4: memref<128x128xbf16, #tpu.memory_space<vmem>>, %arg5: memref<1x128xf32, #tpu.memory_space<vmem>>, %arg6: memref<128x128xbf16, #tpu.memory_space<vmem>>, %arg7: memref<1x128xf32, #tpu.memory_space<vmem>>, %arg8: memref<128x2xbf16, #tpu.memory_space<vmem>>, %arg9: memref<1x2xf32, #tpu.memory_space<vmem>>, %arg10: memref<16x2xf32, #tpu.memory_space<vmem>>) attributes {dimension_semantics = [#tpu.dimension_semantics<parallel>], iteration_bounds = array<i64: 2>, scalar_prefetch = 0 : i64, scratch_operands = 0 : i64, tpu.core_type = #tpu.core_type<tc>, window_params = [{transform_indices = @transform_0, window_bounds = array<i64: 16, 32>}, {pipeline_mode = #tpu.pipeline_mode<synchronous>, transform_indices = @transform_1, window_bounds = array<i64: 32, 128>}, {pipeline_mode = #tpu.pipeline_mode<synchronous>, transform_indices = @transform_2, window_bounds = array<i64: 1, 128>}, {pipeline_mode = #tpu.pipeline_mode<synchronous>, transform_indices = @transform_3, window_bounds = array<i64: 128, 128>}, {pipeline_mode = #tpu.pipeline_mode<synchronous>, transform_indices = @transform_4, window_bounds = array<i64: 1, 128>}, {pipeline_mode = #tpu.pipeline_mode<synchronous>, transform_indices = @transform_5, window_bounds = array<i64: 128, 128>}, {pipeline_mode = #tpu.pipeline_mode<synchronous>, transform_indices = @transform_6, window_bounds = array<i64: 1, 128>}, {pipeline_mode = #tpu.pipeline_mode<synchronous>, transform_indices = @transform_7, window_bounds = array<i64: 128, 2>}, {pipeline_mode = #tpu.pipeline_mode<synchronous>, transform_indices = @transform_8, window_bounds = array<i64: 1, 2>}, {transform_indices = @transform_9, window_bounds = array<i64: 16, 2>}]} {
    %c0 = arith.constant 0 : index
    %c0_0 = arith.constant 0 : index
    %0 = vector.load %arg1[%c0, %c0_0] : memref<16x32xf32, #tpu.memory_space<vmem>>, vector<16x32xf32>
    %c0_1 = arith.constant 0 : index
    %c0_2 = arith.constant 0 : index
    %1 = vector.load %arg2[%c0_1, %c0_2] : memref<32x128xbf16, #tpu.memory_space<vmem>>, vector<32x128xbf16>
    %c0_3 = arith.constant 0 : index
    %c0_4 = arith.constant 0 : index
    %2 = vector.load %arg3[%c0_3, %c0_4] : memref<1x128xf32, #tpu.memory_space<vmem>>, vector<1x128xf32>
    %3 = arith.truncf %0 : vector<16x32xf32> to vector<16x32xbf16>
    %cst = arith.constant dense<0.000000e+00> : vector<16x128xf32>
    %4 = tpu.matmul %3, %1, %cst {dimension_numbers = #tpu.dot_dimension_numbers<[1], [0], [0], [1], [0, 0, 1, 1], [], []>} : vector<16x32xbf16>, vector<32x128xbf16>, vector<16x128xf32> -> vector<16x128xf32>
    %5 = vector.broadcast %2 : vector<1x128xf32> to vector<16x128xf32>
    %6 = arith.addf %4, %5 : vector<16x128xf32>
    %cst_5 = arith.constant 0.000000e+00 : f32
    %7 = vector.broadcast %cst_5 : f32 to vector<16x128xf32>
    %8 = arith.maximumf %6, %7 : vector<16x128xf32>
    %c0_6 = arith.constant 0 : index
    %c0_7 = arith.constant 0 : index
    %9 = vector.load %arg4[%c0_6, %c0_7] : memref<128x128xbf16, #tpu.memory_space<vmem>>, vector<128x128xbf16>
    %c0_8 = arith.constant 0 : index
    %c0_9 = arith.constant 0 : index
    %10 = vector.load %arg5[%c0_8, %c0_9] : memref<1x128xf32, #tpu.memory_space<vmem>>, vector<1x128xf32>
    %11 = arith.truncf %8 : vector<16x128xf32> to vector<16x128xbf16>
    %cst_10 = arith.constant dense<0.000000e+00> : vector<16x128xf32>
    %12 = tpu.matmul %11, %9, %cst_10 {dimension_numbers = #tpu.dot_dimension_numbers<[1], [0], [0], [1], [0, 0, 1, 1], [], []>} : vector<16x128xbf16>, vector<128x128xbf16>, vector<16x128xf32> -> vector<16x128xf32>
    %13 = vector.broadcast %10 : vector<1x128xf32> to vector<16x128xf32>
    %14 = arith.addf %12, %13 : vector<16x128xf32>
    %cst_11 = arith.constant 0.000000e+00 : f32
    %15 = vector.broadcast %cst_11 : f32 to vector<16x128xf32>
    %16 = arith.maximumf %14, %15 : vector<16x128xf32>
    %c0_12 = arith.constant 0 : index
    %c0_13 = arith.constant 0 : index
    %17 = vector.load %arg6[%c0_12, %c0_13] : memref<128x128xbf16, #tpu.memory_space<vmem>>, vector<128x128xbf16>
    %c0_14 = arith.constant 0 : index
    %c0_15 = arith.constant 0 : index
    %18 = vector.load %arg7[%c0_14, %c0_15] : memref<1x128xf32, #tpu.memory_space<vmem>>, vector<1x128xf32>
    %19 = arith.truncf %16 : vector<16x128xf32> to vector<16x128xbf16>
    %cst_16 = arith.constant dense<0.000000e+00> : vector<16x128xf32>
    %20 = tpu.matmul %19, %17, %cst_16 {dimension_numbers = #tpu.dot_dimension_numbers<[1], [0], [0], [1], [0, 0, 1, 1], [], []>} : vector<16x128xbf16>, vector<128x128xbf16>, vector<16x128xf32> -> vector<16x128xf32>
    %21 = vector.broadcast %18 : vector<1x128xf32> to vector<16x128xf32>
    %22 = arith.addf %20, %21 : vector<16x128xf32>
    %cst_17 = arith.constant 0.000000e+00 : f32
    %23 = vector.broadcast %cst_17 : f32 to vector<16x128xf32>
    %24 = arith.maximumf %22, %23 : vector<16x128xf32>
    %c0_18 = arith.constant 0 : index
    %c0_19 = arith.constant 0 : index
    %25 = vector.load %arg8[%c0_18, %c0_19] : memref<128x2xbf16, #tpu.memory_space<vmem>>, vector<128x2xbf16>
    %c0_20 = arith.constant 0 : index
    %c0_21 = arith.constant 0 : index
    %26 = vector.load %arg9[%c0_20, %c0_21] : memref<1x2xf32, #tpu.memory_space<vmem>>, vector<1x2xf32>
    %27 = arith.truncf %24 : vector<16x128xf32> to vector<16x128xbf16>
    %cst_22 = arith.constant dense<0.000000e+00> : vector<16x2xf32>
    %28 = tpu.matmul %27, %25, %cst_22 {dimension_numbers = #tpu.dot_dimension_numbers<[1], [0], [0], [1], [0, 0, 1, 1], [], []>} : vector<16x128xbf16>, vector<128x2xbf16>, vector<16x2xf32> -> vector<16x2xf32>
    %29 = vector.broadcast %26 : vector<1x2xf32> to vector<16x2xf32>
    %30 = arith.addf %28, %29 : vector<16x2xf32>
    %c0_23 = arith.constant 0 : index
    %c0_24 = arith.constant 0 : index
    %31 = vector.load %arg10[%c0_23, %c0_24] : memref<16x2xf32, #tpu.memory_space<vmem>>, vector<16x2xf32>
    tpu.vector_store %arg10[%c0_23, %c0_24], %30 {strides = array<i32>} : memref<16x2xf32, #tpu.memory_space<vmem>>, vector<16x2xf32>,
    return
  }
  func.func @transform_0(%arg0: i32) -> (i32, i32) {
    %c0_i32 = arith.constant 0 : i32
    %c0_i32_0 = arith.constant 0 : i32
    return %arg0, %c0_i32 : i32, i32
  }
  func.func @transform_1(%arg0: i32) -> (i32, i32) {
    %c0_i32 = arith.constant 0 : i32
    %c0_i32_0 = arith.constant 0 : i32
    %c0_i32_1 = arith.constant 0 : i32
    return %c0_i32, %c0_i32_0 : i32, i32
  }
  func.func @transform_2(%arg0: i32) -> (i32, i32) {
    %c0_i32 = arith.constant 0 : i32
    %c0_i32_0 = arith.constant 0 : i32
    %c0_i32_1 = arith.constant 0 : i32
    return %c0_i32, %c0_i32_0 : i32, i32
  }
  func.func @transform_3(%arg0: i32) -> (i32, i32) {
    %c0_i32 = arith.constant 0 : i32
    %c0_i32_0 = arith.constant 0 : i32
    %c0_i32_1 = arith.constant 0 : i32
    return %c0_i32, %c0_i32_0 : i32, i32
  }
  func.func @transform_4(%arg0: i32) -> (i32, i32) {
    %c0_i32 = arith.constant 0 : i32
    %c0_i32_0 = arith.constant 0 : i32
    %c0_i32_1 = arith.constant 0 : i32
    return %c0_i32, %c0_i32_0 : i32, i32
  }
  func.func @transform_5(%arg0: i32) -> (i32, i32) {
    %c0_i32 = arith.constant 0 : i32
    %c0_i32_0 = arith.constant 0 : i32
    %c0_i32_1 = arith.constant 0 : i32
    return %c0_i32, %c0_i32_0 : i32, i32
  }
  func.func @transform_6(%arg0: i32) -> (i32, i32) {
    %c0_i32 = arith.constant 0 : i32
    %c0_i32_0 = arith.constant 0 : i32
    %c0_i32_1 = arith.constant 0 : i32
    return %c0_i32, %c0_i32_0 : i32, i32
  }
  func.func @transform_7(%arg0: i32) -> (i32, i32) {
    %c0_i32 = arith.constant 0 : i32
    %c0_i32_0 = arith.constant 0 : i32
    %c0_i32_1 = arith.constant 0 : i32
    return %c0_i32, %c0_i32_0 : i32, i32
  }
  func.func @transform_8(%arg0: i32) -> (i32, i32) {
    %c0_i32 = arith.constant 0 : i32
    %c0_i32_0 = arith.constant 0 : i32
    %c0_i32_1 = arith.constant 0 : i32
    return %c0_i32, %c0_i32_0 : i32, i32
  }
  func.func @transform_9(%arg0: i32) -> (i32, i32) {
    %c0_i32 = arith.constant 0 : i32
    %c0_i32_0 = arith.constant 0 : i32
    return %arg0, %c0_i32 : i32, i32
  }
}

</mosaic_0001>

<bundles_post_ra>
// kernel: tpu_custom_call.1
= control target key start
LH: loop header
LB: loop body
LE: loop exit
PB: predicated region body
PF: predicated region fallthrough
CT: control target
= control target key end

     0   :  { %14 = vsyncpa [#allocation3], 0  ;;  %s1586_s0 = inlined_call_operand.hbm [shape: f32[32,32], index: 0, kind: input, shape index: {}]   ;;  %s1587_s1 = inlined_call_operand.hbm [shape: bf16[32,128], index: 1, kind: input, shape index: {}]   ;;  %s1588_s2 = inlined_call_operand.vmem [shape: f32[1,128], index: 2, kind: input, shape index: {}]   ;;  %s1589_s3 = inlined_call_operand.vmem [shape: bf16[128,128], index: 3, kind: input, shape index: {}]   ;;  %s1590_s4 = inlined_call_operand.vmem [shape: f32[1,128], index: 4, kind: input, shape index: {}]   ;;  %s1591_s5 = inlined_call_operand.hbm [shape: bf16[128,128], index: 5, kind: input, shape index: {}]   ;;  %s1592_s6 = inlined_call_operand.vmem [shape: f32[1,128], index: 6, kind: input, shape index: {}]   ;;  %s1593_s7 = inlined_call_operand.vmem [shape: bf16[128,2], index: 7, kind: input, shape index: {}]   ;;  %s1594_s8 = inlined_call_operand.vmem [shape: f32[1,2], index: 8, kind: input, shape index: {}]   ;;  %s1595_s9 = inlined_call_operand.vmem [shape: f32[32,2], index: 9, kind: output, shape index: {}]  }
   0x1   :  { %16 = vsyncpa [#allocation3 + $0x1], 0 }
   0x2   :  { %17 = vsyncpa [#allocation5], 0  ;;  %s1314_s30 = smov 0   ;;  %s1316_s10 = smov 0  }
   0x3   :  { %s1318_s11 = smov 0   ;;  %s1320_s12 = smov 0  }
   0x4 LB: > { %s890_s13 = sadd.s32 4294967295, %s1253_s12   ;;  %p43_p0 = scmp.ne.s32.totalorder %s1245_s10, %s1241_s30  ;;  %s1253_s12 = sphi %s1320_s12, %s1611_s12   ;;  %s1249_s11 = sphi %s1318_s11, %s1610_s11   ;;  %s1245_s10 = sphi %s1316_s10, %s1609_s10   ;;  %s1241_s30 = sphi %s1314_s30, %s1608_s30  }
   0x5   : > { %p1336_p1 = scmp.eq.s32.totalorder %s890_s13, 0  ;;  %p892_p2 = scmp.ge.s32.totalorder %s1253_s12, 1 }
   0x6   : > { %p248_p3 = scmp.lt.s32.totalorder %s1253_s12, 3  ;;  %s1255_s17 = smov [#allocation4]  }
   0x7   : > { %s1600_s14 = scalar_select %p1336_p1, 1, 0 }
   0x8   : > { %p1344_p4 = por %p1336_p1, %p43_p0  ;;  %p1348_p5 = pnand %p892_p2, %p248_p3 }
   0x9   : > { %s260_s18 = sshll.u32 %s1255_s17, 4  ;;  %s1256_s20 = smov [#allocation6]   ;;  %s261_s18 = int_to_ptr.vmem [resolvable:$true] %s260_s18 }
   0xa   : > { %s1601_s15 = scalar_select %p1344_p4, 1, 0 }
   0xb   : > { %s1602_s16 = scalar_select %p1348_p5, 1, 0 }
   0xc   : > { %p1047_p6 = pneg %p1348_p5  ;;  %s282_s21 = sshll.u32 %s1256_s20, 4  ;;  %s1360_s21 = int_to_ptr.vmem [resolvable:$true] %s282_s21 }
   0xd   : > { %s1129_s24 = scalar_lea.hbm %s1587_s1, 256 }
   0xe   : > { %p1356_p7 = pnand %p1047_p6, %p1336_p1  ;;  %p1130_p8 = scmp.ne.s32.totalorder %s1587_s1, %s1129_s24 }
   0xf   : > { %p1136_p12 = scmp.lt.u32.totalorder %s1129_s24, %s1587_s1 }
  0x10   : > { %p1131_p9 = pneg %p1356_p7 }
  0x12   : > { %p1132_p10 = pnand %p1131_p9, %p1130_p8 }
  0x14   : > { %p1133_p11 = pneg %p1132_p10 }
  0x16   : > { %p1138_p13 = pnand %p1136_p12, %p1133_p11 }
  0x18   : > { %1141 = shalt.err (!%p1138_p13)
}
  0x19   : > { %s1142_s29 = scalar_lea.vmem %s261_s18, 256  ;;  %p1150_p6 = scmp.lt.s32.totalorder %s261_s18, %s261_s18 }
  0x1a   : > { %p1143_p0 = scmp.ne.s32.totalorder %s261_s18, %s1142_s29  ;;  %p1151_p1 = scmp.lt.s32.totalorder %s1142_s29, %s1142_s29 }
  0x1c   : > { %p1145_p2 = pnand %p1143_p0, %p1131_p9  ;;  %p1152_p4 = por %p1151_p1, %p1150_p6 }
  0x1e   : > { %p1146_p3 = pneg %p1145_p2 }
  0x20   : > { %p1153_p5 = pnand %p1152_p4, %p1146_p3 }
  0x22   : > { %1156 = shalt.err (!%p1153_p5)
}
  0x23   : > { %s1257_s30 = smov 64   ;;  %s1258_s17 = smov 4  }
  0x24   : > { %1050 = dma.hbm_to_vmem [thread:$0]  (!%p1356_p7), %s1587_s1, 256, %s261_s18, [#allocation5], %s1257_s30, %s1257_s30, %s1258_s17  }
  0x25   : > { %s1157_s25 = scalar_lea.hbm %s1591_s5, 1024 }
  0x26   : > { %p1158_p8 = scmp.ne.s32.totalorder %s1591_s5, %s1157_s25  ;;  %p1164_p5 = scmp.lt.u32.totalorder %s1157_s25, %s1591_s5 }
  0x28   : > { %p1160_p1 = pnand %p1158_p8, %p1131_p9 }
  0x2a   : > { %p1161_p4 = pneg %p1160_p1 }
  0x2c   : > { %p1166_p10 = pnand %p1164_p5, %p1161_p4 }
  0x2e   : > { %1169 = shalt.err (!%p1166_p10)
}
  0x2f   : > { %s1170_s18 = scalar_lea.vmem %s1360_s21, 1024  ;;  %p1178_p0 = scmp.lt.s32.totalorder %s1360_s21, %s1360_s21 }
  0x30   : > { %p1171_p11 = scmp.ne.s32.totalorder %s1360_s21, %s1170_s18  ;;  %p1179_p2 = scmp.lt.s32.totalorder %s1170_s18, %s1170_s18 }
  0x32   : > { %p1173_p12 = pnand %p1171_p11, %p1131_p9  ;;  %p1180_p3 = por %p1179_p2, %p1178_p0 }
  0x34   : > { %p1174_p13 = pneg %p1173_p12 }
  0x36   : > { %p1181_p6 = pnand %p1180_p3, %p1174_p13 }
  0x38   : > { %1184 = shalt.err (!%p1181_p6)
}
  0x39   : > { %1053 = dma.hbm_to_vmem [thread:$0]  (!%p1356_p7), %s1591_s5, 1024, %s1360_s21, [#allocation5], %s1257_s30, %s1257_s30, %s1258_s17  }
  0x3a   : > { %s1410_s23 = sadd.s32 1, %s1253_s12   ;;  %s30_s24 = sadd.s32 1, %s1249_s11 }
  0x3b   : > { %s27_s19 = ssub.s32 %s1253_s12, %s1410_s23  ;;  %p37_p9 = scmp.ne.s32.totalorder %s1249_s11, %s1245_s10 }
  0x3c   : > { %p28_p8 = scmp.eq.s32.totalorder %s27_s19, 0  ;;  %p38_p1 = scmp.eq.s32.totalorder %s1253_s12, 0 }
  0x3d   : > { %p1060_p4 = scmp.lt.s32.totalorder %s1253_s12, 2  ;;  %s305_s25 = sand.u32 1, %s1249_s11  }
  0x3e   : > { %s1421_s26 = scalar_select %p28_p8, %s1249_s11, %s30_s24  }
  0x3f   : > { %p39_p5 = por %p38_p1, %p37_p9  ;;  %s896_s27 = sshll.u32 %s305_s25, 4 }
  0x40   : > { %s938_s28 = sshll.u32 %s1253_s12, 8  ;;  %s309_s21 = scalar_lea.vmem [#allocation2], %s896_s27 }
  0x41   : > { %s1427_s20 = scalar_lea.hbm %s1586_s0, %s938_s28  ;;  %s316_s30 = sshll.u32 %s309_s21, 4  ;;  %s1433_s30 = int_to_ptr.vmem [resolvable:$true] %s316_s30 }
  0x42   : > { %p1429_p7 = pnand %p1060_p4, %p39_p5  ;;  %s1435_s22 = scalar_lea.sflag [#allocation3], %s305_s25 }
  0x43   : > { %s1185_s24 = scalar_lea.hbm %s1427_s20, 256  ;;  %s1190_s28 = scalar_lea.hbm %s1586_s0, 512 }
  0x44   : > { %p1186_p10 = scmp.ne.s32.totalorder %s1427_s20, %s1185_s24  ;;  %p1187_p11 = pneg %p1429_p7 }
  0x45   : > { %p1191_p0 = scmp.lt.u32.totalorder %s1427_s20, %s1586_s0  ;;  %p1192_p2 = scmp.lt.u32.totalorder %s1190_s28, %s1185_s24 }
  0x46   : > { %p1188_p12 = pnand %p1187_p11, %p1186_p10  ;;  %p1194_p6 = scmp.lt.u32.totalorder %s1185_s24, %s1427_s20 }
  0x47   : > { %p1193_p3 = por %p1192_p2, %p1191_p0 }
  0x48   : > { %p1189_p13 = pneg %p1188_p12 }
  0x49   : > { %p1195_p9 = por %p1194_p6, %p1193_p3 }
  0x4b   : > { %p1196_p8 = pnand %p1195_p9, %p1189_p13 }
  0x4d   : > { %1199 = shalt.err (!%p1196_p8)
}
  0x4e   : > { %s1200_s25 = scalar_lea.vmem %s1433_s30, 256  ;;  %s1259_s21 = smov [#allocation2]  }
  0x4f   : > { %p1201_p1 = scmp.ne.s32.totalorder %s1433_s30, %s1200_s25  ;;  %s1205_s19 = sshll.u32 %s1259_s21, 4  ;;  %s1206_s19 = int_to_ptr.vmem [resolvable:$false] %s1205_s19 }
  0x50   : > { %s1207_s27 = scalar_lea.vmem %s1206_s19, 512  ;;  %p1208_p10 = scmp.lt.s32.totalorder %s1433_s30, %s1206_s19 }
  0x51   : > { %p1203_p4 = pnand %p1201_p1, %p1187_p11  ;;  %p1209_p12 = scmp.lt.s32.totalorder %s1207_s27, %s1200_s25 }
  0x53   : > { %p1204_p5 = pneg %p1203_p4  ;;  %p1210_p0 = por %p1209_p12, %p1208_p10 }
  0x55   : > { %p1211_p2 = pnand %p1210_p0, %p1204_p5 }
  0x57   : > { %1214 = shalt.err (!%p1211_p2)
}
  0x58   : > { %s1260_s24 = smov 128   ;;  %s1261_s28 = smov 8  }
  0x59   : > { %1057 = dma.hbm_to_vmem [thread:$0]  (!%p1429_p7), %s1427_s20, 256, %s1433_s30, %s1435_s22, %s1260_s24, %s1260_s24, %s1261_s28  }
  0x5a   : > { %p1605_p11 = scmp.ne.s32.totalorder %s1602_s16, 0 }
  0x5b   : > { %s330_s29 = sand.u32 (!%p1605_p11), 1, %s1245_s10   ;;  %p1606_p13 = scmp.ne.s32.totalorder (!%p1605_p11), %s1601_s15, 0 }
  0x5c   : > { %328 = sbr.rel (%p1605_p11) target bundleno = 990 (0x3de), region = 56  ;;  %s900_s18 = sshll.u32 (!%p1605_p11), %s330_s29, 4 }
  0x5d   : > { %s331_s21 = scalar_lea.sflag (!%p1605_p11), [#allocation3], %s330_s29  ;;  %s334_s25 = scalar_lea.vmem (!%p1605_p11), [#allocation2], %s900_s18 }
  0x63   : > { %1232 = dma.done.wait (%p1606_p13), %s331_s21, 256  }
  0x64   : > { %1234 = vsyncadd (%p1606_p13), %s331_s21, 4294967040  ;;  %p1607_p3 = scmp.ne.s32.totalorder %s1600_s14, 0 }
  0x66   : > { %1236 = dma.done.wait (%p1607_p3), [#allocation5], 1280  }
  0x67   : > { %1238 = vsyncadd (%p1607_p3), [#allocation5], 4294966016  ;;  %v1262_v0 = vmov 0.0   ;;  %vm1263_vm0 = vmmov 0   ;;  %v1103_v1 = vld [vmem:[#allocation4] sm:$0xff]   ;;  %v1104_v2 = vld [vmem:[#allocation4 + $0x8] sm:$0xff]  }
  0x68   : > { %969 = vmatprep.subr.bf16.mxu0 %v1262_v0  ;;  %973 = vmatprep.mubr.msk.bf16.mxu0 %vm1263_vm0, %v1262_v0  ;;  %v385_v3 = vld [vmem:[%s334_s25] sm:$0xff]  ;;  %v386_v4 = vld [vmem:[%s334_s25 + $0x8] sm:$0xff]  ;;  %vm411_vm1 = vcmask 261120   ;;  %s903_s27 = sshll.u32 %s890_s13, 1  ;;  %vm801_vm2 = vcmask 15360  }
  0x69   : > { %977 = vmatprep.subr.bf16.mxu1 %v1262_v0  ;;  %993 = vmatprep.mubr.msk.bf16.mxu1 %vm1263_vm0, %v1262_v0  ;;  %v1105_v5 = vld [vmem:[%s1589_s3] sm:$0xff]   ;;  %v392_v6 = vpack.c.bf16 %v386_v4, %v385_v3  ;;  %v1106_v7 = vld [vmem:[%s1589_s3 + $0x8] sm:$0xff]   ;;  %v1107_v8 = vld [vmem:[%s1589_s3 + $0x10] sm:$0xff]   ;;  %p379_p7 = scmp.lt.s32.totalorder %s903_s27, 3 }
  0x6a   : > { %970 = vmatpush3.bf16.msra.mxu0 %v1103_v1  ;;  %978 = vmatpush3.bf16.msra.mxu1 %v1105_v5  ;;  %v1108_v9 = vld [vmem:[%s1589_s3 + $0x18] sm:$0xff]   ;;  %v1109_v10 = vld [vmem:[%s1589_s3 + $0x20] sm:$0xff]   ;;  %v1110_v11 = vld [vmem:[%s1589_s3 + $0x28] sm:$0xff]  }
  0x6b   : > { %971 = vmatprep.subr.bf16.mxu0 %v1262_v0  ;;  %979 = vmatprep.subr.bf16.mxu1 %v1262_v0  ;;  %v1111_v12 = vld [vmem:[%s1589_s3 + $0x30] sm:$0xff]   ;;  %v1112_v13 = vld [vmem:[%s1589_s3 + $0x38] sm:$0xff]   ;;  %v1115_v16 = vld [vmem:[#allocation6 + $0x10] sm:$0xff]   ;;  %s1613_s27 = smov (!%p379_p7, %s903_s27), 3 }
  0x6c   : > { %v1113_v14 = vld [vmem:[#allocation6] sm:$0xff]   ;;  %v1114_v15 = vld [vmem:[#allocation6 + $0x8] sm:$0xff]   ;;  %v1116_v17 = vld [vmem:[#allocation6 + $0x18] sm:$0xff]   ;;  %s904_s24 = sshll.u32 %s1613_s27, 3 }
  0x6d   : > { %v1117_v18 = vld [vmem:[#allocation6 + $0x20] sm:$0xff]   ;;  %v1118_v19 = vld [vmem:[#allocation6 + $0x28] sm:$0xff]   ;;  %v905_v20 = vld [vmem:[%s1588_s2] ss:$0 sm:$0xff]  ;;  %s382_s25 = scalar_lea.vmem %s1595_s9, %s904_s24 }
  0x6e   : > { %972 = vmatpush3.bf16.msra.mxu0 %v1104_v2  ;;  %980 = vmatpush3.bf16.msra.mxu1 %v1106_v7  ;;  %v1119_v30 = vld [vmem:[#allocation6 + $0x30] sm:$0xff]   ;;  %v1120_v31 = vld [vmem:[#allocation6 + $0x38] sm:$0xff]   ;;  %v1123_v34 = vld [vmem:[%s1593_s7 + $0x10] sm:$0xff]  }
  0x6f   : > { %997 = vmatprep.subr.bf16.mxu0 %v1262_v0  ;;  %981 = vmatprep.subr.bf16.mxu1 %v1262_v0  ;;  %v1121_v32 = vld [vmem:[%s1593_s7] sm:$0xff]   ;;  %v1122_v33 = vld [vmem:[%s1593_s7 + $0x8] sm:$0xff]   ;;  %v1124_v35 = vld [vmem:[%s1593_s7 + $0x18] sm:$0xff]  }
  0x70   : > { %v1125_v36 = vld [vmem:[%s1593_s7 + $0x20] sm:$0xff]   ;;  %v1126_v37 = vld [vmem:[%s1593_s7 + $0x28] sm:$0xff]   ;;  %v1127_v48 = vld [vmem:[%s1593_s7 + $0x30] sm:$0xff]  }
  0x71   : > { %974 = vmatmul.mubr.msk.bf16.vlgmr.msra.gmra.mrb[0].mxu0 %vm411_vm1, %v392_v6  ;;  %v909_v38 = vld [vmem:[%s1590_s4] ss:$0 sm:$0xff]  ;;  %v1128_v49 = vld [vmem:[%s1593_s7 + $0x38] sm:$0xff]  }
  0x72   : > { %1013 = vmatprep.mubr.msk.bf16.mxu0 %vm1263_vm0, %v1262_v0  ;;  %982 = vmatpush3.bf16.msra.mxu1 %v1107_v8  ;;  %v918_v50 = vld [vmem:[%s1592_s6] ss:$0 sm:$0xff] }
  0x73   : > { %983 = vmatprep.subr.bf16.mxu1 %v1262_v0  ;;  %998 = vmatpush3.bf16.msra.mxu0 %v1113_v14  ;;  %v927_v60 = vld [vmem:[%s1594_s8] ss:$0 sm:$0xff] }
  0x74   : > { %999 = vmatprep.subr.bf16.mxu0 %v1262_v0 }
  0x76   : > { %984 = vmatpush3.bf16.msra.mxu1 %v1108_v9 }
  0x77   : > { %985 = vmatprep.subr.bf16.mxu1 %v1262_v0  ;;  %1000 = vmatpush3.bf16.msra.mxu0 %v1114_v15 }
  0x78   : > { %1001 = vmatprep.subr.bf16.mxu0 %v1262_v0 }
  0x7a   : > { %986 = vmatpush3.bf16.msra.mxu1 %v1109_v10 }
  0x7b   : > { %987 = vmatprep.subr.bf16.mxu1 %v1262_v0  ;;  %1002 = vmatpush3.bf16.msra.mxu0 %v1115_v16 }
  0x7c   : > { %1003 = vmatprep.subr.bf16.mxu0 %v1262_v0 }
  0x7e   : > { %988 = vmatpush3.bf16.msra.mxu1 %v1110_v11 }
  0x7f   : > { %989 = vmatprep.subr.bf16.mxu1 %v1262_v0  ;;  %1004 = vmatpush3.bf16.msra.mxu0 %v1116_v17 }
  0x80   : > { %1005 = vmatprep.subr.bf16.mxu0 %v1262_v0 }
  0x82   : > { %990 = vmatpush3.bf16.msra.mxu1 %v1111_v12 }
  0x83   : > { %991 = vmatprep.subr.bf16.mxu1 %v1262_v0  ;;  %1006 = vmatpush3.bf16.msra.mxu0 %v1117_v18 }
  0x84   : > { %1007 = vmatprep.subr.bf16.mxu0 %v1262_v0 }
  0x86   : > { %992 = vmatpush3.bf16.msra.mxu1 %v1112_v13 }
  0x87   : > { %1017 = vmatprep.subr.bf16.mxu1 %v1262_v0  ;;  %1008 = vmatpush3.bf16.msra.mxu0 %v1118_v19 }
  0x88   : > { %1009 = vmatprep.subr.bf16.mxu0 %v1262_v0 }
  0x8b   : > { %1010 = vmatpush3.bf16.msra.mxu0 %v1119_v30 }
  0x8c   : > { %1011 = vmatprep.subr.bf16.mxu0 %v1262_v0 }
  0x8f   : > { %1012 = vmatpush3.bf16.msra.mxu0 %v1120_v31 }
 0x144   : > { %v449_v21 = vpop.f32.mrb[0].mxu0 }
 0x145   : > { %v450_v22 = vadd.f32 %v905_v20, %v449_v21  ;;  %v975_v23 = vpop.f32.mrb[1].mxu0 }
 0x146   : > { %v452_v24 = vpop.f32.mrb[2].mxu0 }
 0x147   : > { %v453_v25 = vadd.f32 %v905_v20, %v452_v24  ;;  %v976_v26 = vpop.f32.mrb[3].mxu0  ;;  %v456_v27 = vmax.f32 %v450_v22, 0.0 }
 0x149   : > { %v457_v28 = vmax.f32 %v453_v25, 0.0 }
 0x14b   : > { %v475_v29 = vpack.c.bf16 %v457_v28, %v456_v27 }
 0x14d   : > { %994 = vmatmul.mubr.bf16.vlgmr.msra.gmra.mrb[0].mxu1 %v475_v29 }
 0x14e   : > { %1033 = vmatprep.mubr.msk.bf16.mxu1 %vm1263_vm0, %v1262_v0  ;;  %1018 = vmatpush3.bf16.msra.mxu1 %v1121_v32 }
 0x14f   : > { %1019 = vmatprep.subr.bf16.mxu1 %v1262_v0 }
 0x152   : > { %1020 = vmatpush3.bf16.msra.mxu1 %v1122_v33 }
 0x153   : > { %1021 = vmatprep.subr.bf16.mxu1 %v1262_v0 }
 0x156   : > { %1022 = vmatpush3.bf16.msra.mxu1 %v1123_v34 }
 0x157   : > { %1023 = vmatprep.subr.bf16.mxu1 %v1262_v0 }
 0x15a   : > { %1024 = vmatpush3.bf16.msra.mxu1 %v1124_v35 }
 0x15b   : > { %1025 = vmatprep.subr.bf16.mxu1 %v1262_v0 }
 0x15e   : > { %1026 = vmatpush3.bf16.msra.mxu1 %v1125_v36 }
 0x15f   : > { %1027 = vmatprep.subr.bf16.mxu1 %v1262_v0 }
 0x162   : > { %1028 = vmatpush3.bf16.msra.mxu1 %v1126_v37 }
 0x163   : > { %1029 = vmatprep.subr.bf16.mxu1 %v1262_v0 }
 0x166   : > { %1030 = vmatpush3.bf16.msra.mxu1 %v1127_v48 }
 0x167   : > { %1031 = vmatprep.subr.bf16.mxu1 %v1262_v0 }
 0x16a   : > { %1032 = vmatpush3.bf16.msra.mxu1 %v1128_v49 }
 0x220   : > { %v564_v39 = vpop.f32.mrb[0].mxu1 }
 0x221   : > { %v565_v40 = vadd.f32 %v909_v38, %v564_v39  ;;  %v995_v41 = vpop.f32.mrb[1].mxu1 }
 0x222   : > { %v567_v42 = vpop.f32.mrb[2].mxu1 }
 0x223   : > { %v568_v43 = vadd.f32 %v909_v38, %v567_v42  ;;  %v996_v44 = vpop.f32.mrb[3].mxu1  ;;  %v571_v45 = vmax.f32 %v565_v40, 0.0 }
 0x225   : > { %v572_v46 = vmax.f32 %v568_v43, 0.0 }
 0x227   : > { %v590_v47 = vpack.c.bf16 %v572_v46, %v571_v45 }
 0x229   : > { %1014 = vmatmul.mubr.bf16.vlgmr.msra.gmra.mrb[4].mxu0 %v590_v47 }
 0x2fc   : > { %v679_v51 = vpop.f32.mrb[4].mxu0 }
 0x2fd   : > { %v680_v52 = vadd.f32 %v918_v50, %v679_v51  ;;  %v1015_v53 = vpop.f32.mrb[5].mxu0 }
 0x2fe   : > { %v682_v54 = vpop.f32.mrb[6].mxu0 }
 0x2ff   : > { %v683_v55 = vadd.f32 %v918_v50, %v682_v54  ;;  %v1016_v56 = vpop.f32.mrb[7].mxu0  ;;  %v686_v57 = vmax.f32 %v680_v52, 0.0 }
 0x301   : > { %v687_v58 = vmax.f32 %v683_v55, 0.0 }
 0x303   : > { %v705_v59 = vpack.c.bf16 %v687_v58, %v686_v57 }
 0x305   : > { %1034 = vmatmul.mubr.bf16.vlgmr.msra.gmra.mrb[4].mxu1 %v705_v59 }
 0x3d8   : > { %v794_v61 = vpop.f32.mrb[4].mxu1 }
 0x3d9   : > { %v795_v62 = vadd.f32 %v927_v60, %v794_v61  ;;  %v1035_v63 = vpop.f32.mrb[5].mxu1 }
 0x3da   : > { %v797_v0 = vpop.f32.mrb[6].mxu1 }
 0x3db   : > { %802 = vst.msk [vmem:[%s382_s25] sm:$0xff] %vm801_vm2, %v795_v62  ;;  %v798_v1 = vadd.f32 %v927_v60, %v797_v0  ;;  %v1036_v2 = vpop.f32.mrb[7].mxu1 }
 0x3dd   : > { %803 = vst.msk [vmem:[%s382_s25 + $0x8] sm:$0xff] %vm801_vm2, %v798_v1 }
 0x3de PF: > { %p20_p6 = scmp.ge.s32.totalorder %s1410_s23, 4   ;;  %s1608_s30 = smov %s1245_s10 }
 0x3df   : > { %s1609_s10 = smov %s1249_s11  ;;  %s1610_s11 = smov %s1421_s26 }
 0x3e0   : > { %s1611_s12 = smov %s1410_s23  ;;  %22 = sbr.rel (!%p20_p6) target bundleno = 4 (0x4), region = 104 }
 0x3e7   :  { %826 = vsyncpa [#allocation3], 1 }
 0x3e8   :  { %828 = vsyncpa [#allocation3 + $0x1], 1 }
 0x3e9   :  { %829 = vsyncpa [#allocation5], 1 }

// kernel: tpu_custom_call.1
= control target key start
LH: loop header
LB: loop body
LE: loop exit
PB: predicated region body
PF: predicated region fallthrough
CT: control target
= control target key end

     0   :  { %14 = vsyncpa [#allocation3], 0  ;;  %s1586_s0 = inlined_call_operand.hbm [shape: f32[32,32], index: 0, kind: input, shape index: {}]   ;;  %s1587_s1 = inlined_call_operand.hbm [shape: bf16[32,128], index: 1, kind: input, shape index: {}]   ;;  %s1588_s2 = inlined_call_operand.vmem [shape: f32[1,128], index: 2, kind: input, shape index: {}]   ;;  %s1589_s3 = inlined_call_operand.vmem [shape: bf16[128,128], index: 3, kind: input, shape index: {}]   ;;  %s1590_s4 = inlined_call_operand.vmem [shape: f32[1,128], index: 4, kind: input, shape index: {}]   ;;  %s1591_s5 = inlined_call_operand.hbm [shape: bf16[128,128], index: 5, kind: input, shape index: {}]   ;;  %s1592_s6 = inlined_call_operand.vmem [shape: f32[1,128], index: 6, kind: input, shape index: {}]   ;;  %s1593_s7 = inlined_call_operand.vmem [shape: bf16[128,2], index: 7, kind: input, shape index: {}]   ;;  %s1594_s8 = inlined_call_operand.vmem [shape: f32[1,2], index: 8, kind: input, shape index: {}]   ;;  %s1595_s9 = inlined_call_operand.vmem [shape: f32[32,2], index: 9, kind: output, shape index: {}]  }
   0x1   :  { %16 = vsyncpa [#allocation3 + $0x1], 0 }
   0x2   :  { %17 = vsyncpa [#allocation5], 0  ;;  %s1314_s30 = smov 0   ;;  %s1316_s10 = smov 0  }
   0x3   :  { %s1318_s11 = smov 0   ;;  %s1320_s12 = smov 0  }
   0x4 LB: > { %s890_s13 = sadd.s32 4294967295, %s1253_s12   ;;  %p43_p0 = scmp.ne.s32.totalorder %s1245_s10, %s1241_s30  ;;  %s1253_s12 = sphi %s1320_s12, %s1611_s12   ;;  %s1249_s11 = sphi %s1318_s11, %s1610_s11   ;;  %s1245_s10 = sphi %s1316_s10, %s1609_s10   ;;  %s1241_s30 = sphi %s1314_s30, %s1608_s30  }
   0x5   : > { %p1336_p1 = scmp.eq.s32.totalorder %s890_s13, 0  ;;  %p892_p2 = scmp.ge.s32.totalorder %s1253_s12, 1 }
   0x6   : > { %p248_p3 = scmp.lt.s32.totalorder %s1253_s12, 3  ;;  %s1255_s17 = smov [#allocation4]  }
   0x7   : > { %s1600_s14 = scalar_select %p1336_p1, 1, 0 }
   0x8   : > { %p1344_p4 = por %p1336_p1, %p43_p0  ;;  %p1348_p5 = pnand %p892_p2, %p248_p3 }
   0x9   : > { %s260_s18 = sshll.u32 %s1255_s17, 4  ;;  %s1256_s20 = smov [#allocation6]   ;;  %s261_s18 = int_to_ptr.vmem [resolvable:$true] %s260_s18 }
   0xa   : > { %s1601_s15 = scalar_select %p1344_p4, 1, 0 }
   0xb   : > { %s1602_s16 = scalar_select %p1348_p5, 1, 0 }
   0xc   : > { %p1047_p6 = pneg %p1348_p5  ;;  %s282_s21 = sshll.u32 %s1256_s20, 4  ;;  %s1360_s21 = int_to_ptr.vmem [resolvable:$true] %s282_s21 }
   0xd   : > { %s1129_s24 = scalar_lea.hbm %s1587_s1, 256 }
   0xe   : > { %p1356_p7 = pnand %p1047_p6, %p1336_p1  ;;  %p1130_p8 = scmp.ne.s32.totalorder %s1587_s1, %s1129_s24 }
   0xf   : > { %p1136_p12 = scmp.lt.u32.totalorder %s1129_s24, %s1587_s1 }
  0x10   : > { %p1131_p9 = pneg %p1356_p7 }
  0x12   : > { %p1132_p10 = pnand %p1131_p9, %p1130_p8 }
  0x14   : > { %p1133_p11 = pneg %p1132_p10 }
  0x16   : > { %p1138_p13 = pnand %p1136_p12, %p1133_p11 }
  0x18   : > { %1141 = shalt.err (!%p1138_p13)
}
  0x19   : > { %s1142_s29 = scalar_lea.vmem %s261_s18, 256  ;;  %p1150_p6 = scmp.lt.s32.totalorder %s261_s18, %s261_s18 }
  0x1a   : > { %p1143_p0 = scmp.ne.s32.totalorder %s261_s18, %s1142_s29  ;;  %p1151_p1 = scmp.lt.s32.totalorder %s1142_s29, %s1142_s29 }
  0x1c   : > { %p1145_p2 = pnand %p1143_p0, %p1131_p9  ;;  %p1152_p4 = por %p1151_p1, %p1150_p6 }
  0x1e   : > { %p1146_p3 = pneg %p1145_p2 }
  0x20   : > { %p1153_p5 = pnand %p1152_p4, %p1146_p3 }
  0x22   : > { %1156 = shalt.err (!%p1153_p5)
}
  0x23   : > { %s1257_s30 = smov 64   ;;  %s1258_s17 = smov 4  }
  0x24   : > { %1050 = dma.hbm_to_vmem [thread:$0]  (!%p1356_p7), %s1587_s1, 256, %s261_s18, [#allocation5], %s1257_s30, %s1257_s30, %s1258_s17  }
  0x25   : > { %s1157_s25 = scalar_lea.hbm %s1591_s5, 1024 }
  0x26   : > { %p1158_p8 = scmp.ne.s32.totalorder %s1591_s5, %s1157_s25  ;;  %p1164_p5 = scmp.lt.u32.totalorder %s1157_s25, %s1591_s5 }
  0x28   : > { %p1160_p1 = pnand %p1158_p8, %p1131_p9 }
  0x2a   : > { %p1161_p4 = pneg %p1160_p1 }
  0x2c   : > { %p1166_p10 = pnand %p1164_p5, %p1161_p4 }
  0x2e   : > { %1169 = shalt.err (!%p1166_p10)
}
  0x2f   : > { %s1170_s18 = scalar_lea.vmem %s1360_s21, 1024  ;;  %p1178_p0 = scmp.lt.s32.totalorder %s1360_s21, %s1360_s21 }
  0x30   : > { %p1171_p11 = scmp.ne.s32.totalorder %s1360_s21, %s1170_s18  ;;  %p1179_p2 = scmp.lt.s32.totalorder %s1170_s18, %s1170_s18 }
  0x32   : > { %p1173_p12 = pnand %p1171_p11, %p1131_p9  ;;  %p1180_p3 = por %p1179_p2, %p1178_p0 }
  0x34   : > { %p1174_p13 = pneg %p1173_p12 }
  0x36   : > { %p1181_p6 = pnand %p1180_p3, %p1174_p13 }
  0x38   : > { %1184 = shalt.err (!%p1181_p6)
}
  0x39   : > { %1053 = dma.hbm_to_vmem [thread:$0]  (!%p1356_p7), %s1591_s5, 1024, %s1360_s21, [#allocation5], %s1257_s30, %s1257_s30, %s1258_s17  }
  0x3a   : > { %s1410_s23 = sadd.s32 1, %s1253_s12   ;;  %s30_s24 = sadd.s32 1, %s1249_s11 }
  0x3b   : > { %s27_s19 = ssub.s32 %s1253_s12, %s1410_s23  ;;  %p37_p9 = scmp.ne.s32.totalorder %s1249_s11, %s1245_s10 }
  0x3c   : > { %p28_p8 = scmp.eq.s32.totalorder %s27_s19, 0  ;;  %p38_p1 = scmp.eq.s32.totalorder %s1253_s12, 0 }
  0x3d   : > { %p1060_p4 = scmp.lt.s32.totalorder %s1253_s12, 2  ;;  %s305_s25 = sand.u32 1, %s1249_s11  }
  0x3e   : > { %s1421_s26 = scalar_select %p28_p8, %s1249_s11, %s30_s24  }
  0x3f   : > { %p39_p5 = por %p38_p1, %p37_p9  ;;  %s896_s27 = sshll.u32 %s305_s25, 4 }
  0x40   : > { %s938_s28 = sshll.u32 %s1253_s12, 8  ;;  %s309_s21 = scalar_lea.vmem [#allocation2], %s896_s27 }
  0x41   : > { %s1427_s20 = scalar_lea.hbm %s1586_s0, %s938_s28  ;;  %s316_s30 = sshll.u32 %s309_s21, 4  ;;  %s1433_s30 = int_to_ptr.vmem [resolvable:$true] %s316_s30 }
  0x42   : > { %p1429_p7 = pnand %p1060_p4, %p39_p5  ;;  %s1435_s22 = scalar_lea.sflag [#allocation3], %s305_s25 }
  0x43   : > { %s1185_s24 = scalar_lea.hbm %s1427_s20, 256  ;;  %s1190_s28 = scalar_lea.hbm %s1586_s0, 512 }
  0x44   : > { %p1186_p10 = scmp.ne.s32.totalorder %s1427_s20, %s1185_s24  ;;  %p1187_p11 = pneg %p1429_p7 }
  0x45   : > { %p1191_p0 = scmp.lt.u32.totalorder %s1427_s20, %s1586_s0  ;;  %p1192_p2 = scmp.lt.u32.totalorder %s1190_s28, %s1185_s24 }
  0x46   : > { %p1188_p12 = pnand %p1187_p11, %p1186_p10  ;;  %p1194_p6 = scmp.lt.u32.totalorder %s1185_s24, %s1427_s20 }
  0x47   : > { %p1193_p3 = por %p1192_p2, %p1191_p0 }
  0x48   : > { %p1189_p13 = pneg %p1188_p12 }
  0x49   : > { %p1195_p9 = por %p1194_p6, %p1193_p3 }
  0x4b   : > { %p1196_p8 = pnand %p1195_p9, %p1189_p13 }
  0x4d   : > { %1199 = shalt.err (!%p1196_p8)
}
  0x4e   : > { %s1200_s25 = scalar_lea.vmem %s1433_s30, 256  ;;  %s1259_s21 = smov [#allocation2]  }
  0x4f   : > { %p1201_p1 = scmp.ne.s32.totalorder %s1433_s30, %s1200_s25  ;;  %s1205_s19 = sshll.u32 %s1259_s21, 4  ;;  %s1206_s19 = int_to_ptr.vmem [resolvable:$false] %s1205_s19 }
  0x50   : > { %s1207_s27 = scalar_lea.vmem %s1206_s19, 512  ;;  %p1208_p10 = scmp.lt.s32.totalorder %s1433_s30, %s1206_s19 }
  0x51   : > { %p1203_p4 = pnand %p1201_p1, %p1187_p11  ;;  %p1209_p12 = scmp.lt.s32.totalorder %s1207_s27, %s1200_s25 }
  0x53   : > { %p1204_p5 = pneg %p1203_p4  ;;  %p1210_p0 = por %p1209_p12, %p1208_p10 }
  0x55   : > { %p1211_p2 = pnand %p1210_p0, %p1204_p5 }
  0x57   : > { %1214 = shalt.err (!%p1211_p2)
}
  0x58   : > { %s1260_s24 = smov 128   ;;  %s1261_s28 = smov 8  }
  0x59   : > { %1057 = dma.hbm_to_vmem [thread:$0]  (!%p1429_p7), %s1427_s20, 256, %s1433_s30, %s1435_s22, %s1260_s24, %s1260_s24, %s1261_s28  }
  0x5a   : > { %p1605_p11 = scmp.ne.s32.totalorder %s1602_s16, 0 }
  0x5b   : > { %s330_s29 = sand.u32 (!%p1605_p11), 1, %s1245_s10   ;;  %p1606_p13 = scmp.ne.s32.totalorder (!%p1605_p11), %s1601_s15, 0 }
  0x5c   : > { %328 = sbr.rel (%p1605_p11) target bundleno = 990 (0x3de), region = 56  ;;  %s900_s18 = sshll.u32 (!%p1605_p11), %s330_s29, 4 }
  0x5d   : > { %s331_s21 = scalar_lea.sflag (!%p1605_p11), [#allocation3], %s330_s29  ;;  %s334_s25 = scalar_lea.vmem (!%p1605_p11), [#allocation2], %s900_s18 }
  0x63   : > { %1232 = dma.done.wait (%p1606_p13), %s331_s21, 256  }
  0x64   : > { %1234 = vsyncadd (%p1606_p13), %s331_s21, 4294967040  ;;  %p1607_p3 = scmp.ne.s32.totalorder %s1600_s14, 0 }
  0x66   : > { %1236 = dma.done.wait (%p1607_p3), [#allocation5], 1280  }
  0x67   : > { %1238 = vsyncadd (%p1607_p3), [#allocation5], 4294966016  ;;  %v1262_v0 = vmov 0.0   ;;  %vm1263_vm0 = vmmov 0   ;;  %v1103_v1 = vld [vmem:[#allocation4] sm:$0xff]   ;;  %v1104_v2 = vld [vmem:[#allocation4 + $0x8] sm:$0xff]  }
  0x68   : > { %969 = vmatprep.subr.bf16.mxu0 %v1262_v0  ;;  %973 = vmatprep.mubr.msk.bf16.mxu0 %vm1263_vm0, %v1262_v0  ;;  %v385_v3 = vld [vmem:[%s334_s25] sm:$0xff]  ;;  %v386_v4 = vld [vmem:[%s334_s25 + $0x8] sm:$0xff]  ;;  %vm411_vm1 = vcmask 261120   ;;  %s903_s27 = sshll.u32 %s890_s13, 1  ;;  %vm801_vm2 = vcmask 15360  }
  0x69   : > { %977 = vmatprep.subr.bf16.mxu1 %v1262_v0  ;;  %993 = vmatprep.mubr.msk.bf16.mxu1 %vm1263_vm0, %v1262_v0  ;;  %v1105_v5 = vld [vmem:[%s1589_s3] sm:$0xff]   ;;  %v392_v6 = vpack.c.bf16 %v386_v4, %v385_v3  ;;  %v1106_v7 = vld [vmem:[%s1589_s3 + $0x8] sm:$0xff]   ;;  %v1107_v8 = vld [vmem:[%s1589_s3 + $0x10] sm:$0xff]   ;;  %p379_p7 = scmp.lt.s32.totalorder %s903_s27, 3 }
  0x6a   : > { %970 = vmatpush3.bf16.msra.mxu0 %v1103_v1  ;;  %978 = vmatpush3.bf16.msra.mxu1 %v1105_v5  ;;  %v1108_v9 = vld [vmem:[%s1589_s3 + $0x18] sm:$0xff]   ;;  %v1109_v10 = vld [vmem:[%s1589_s3 + $0x20] sm:$0xff]   ;;  %v1110_v11 = vld [vmem:[%s1589_s3 + $0x28] sm:$0xff]  }
  0x6b   : > { %971 = vmatprep.subr.bf16.mxu0 %v1262_v0  ;;  %979 = vmatprep.subr.bf16.mxu1 %v1262_v0  ;;  %v1111_v12 = vld [vmem:[%s1589_s3 + $0x30] sm:$0xff]   ;;  %v1112_v13 = vld [vmem:[%s1589_s3 + $0x38] sm:$0xff]   ;;  %v1115_v16 = vld [vmem:[#allocation6 + $0x10] sm:$0xff]   ;;  %s1613_s27 = smov (!%p379_p7, %s903_s27), 3 }
  0x6c   : > { %v1113_v14 = vld [vmem:[#allocation6] sm:$0xff]   ;;  %v1114_v15 = vld [vmem:[#allocation6 + $0x8] sm:$0xff]   ;;  %v1116_v17 = vld [vmem:[#allocation6 + $0x18] sm:$0xff]   ;;  %s904_s24 = sshll.u32 %s1613_s27, 3 }
  0x6d   : > { %v1117_v18 = vld [vmem:[#allocation6 + $0x20] sm:$0xff]   ;;  %v1118_v19 = vld [vmem:[#allocation6 + $0x28] sm:$0xff]   ;;  %v905_v20 = vld [vmem:[%s1588_s2] ss:$0 sm:$0xff]  ;;  %s382_s25 = scalar_lea.vmem %s1595_s9, %s904_s24 }
  0x6e   : > { %972 = vmatpush3.bf16.msra.mxu0 %v1104_v2  ;;  %980 = vmatpush3.bf16.msra.mxu1 %v1106_v7  ;;  %v1119_v30 = vld [vmem:[#allocation6 + $0x30] sm:$0xff]   ;;  %v1120_v31 = vld [vmem:[#allocation6 + $0x38] sm:$0xff]   ;;  %v1123_v34 = vld [vmem:[%s1593_s7 + $0x10] sm:$0xff]  }
  0x6f   : > { %997 = vmatprep.subr.bf16.mxu0 %v1262_v0  ;;  %981 = vmatprep.subr.bf16.mxu1 %v1262_v0  ;;  %v1121_v32 = vld [vmem:[%s1593_s7] sm:$0xff]   ;;  %v1122_v33 = vld [vmem:[%s1593_s7 + $0x8] sm:$0xff]   ;;  %v1124_v35 = vld [vmem:[%s1593_s7 + $0x18] sm:$0xff]  }
  0x70   : > { %v1125_v36 = vld [vmem:[%s1593_s7 + $0x20] sm:$0xff]   ;;  %v1126_v37 = vld [vmem:[%s1593_s7 + $0x28] sm:$0xff]   ;;  %v1127_v48 = vld [vmem:[%s1593_s7 + $0x30] sm:$0xff]  }
  0x71   : > { %974 = vmatmul.mubr.msk.bf16.vlgmr.msra.gmra.mrb[0].mxu0 %vm411_vm1, %v392_v6  ;;  %v909_v38 = vld [vmem:[%s1590_s4] ss:$0 sm:$0xff]  ;;  %v1128_v49 = vld [vmem:[%s1593_s7 + $0x38] sm:$0xff]  }
  0x72   : > { %1013 = vmatprep.mubr.msk.bf16.mxu0 %vm1263_vm0, %v1262_v0  ;;  %982 = vmatpush3.bf16.msra.mxu1 %v1107_v8  ;;  %v918_v50 = vld [vmem:[%s1592_s6] ss:$0 sm:$0xff] }
  0x73   : > { %983 = vmatprep.subr.bf16.mxu1 %v1262_v0  ;;  %998 = vmatpush3.bf16.msra.mxu0 %v1113_v14  ;;  %v927_v60 = vld [vmem:[%s1594_s8] ss:$0 sm:$0xff] }
  0x74   : > { %999 = vmatprep.subr.bf16.mxu0 %v1262_v0 }
  0x76   : > { %984 = vmatpush3.bf16.msra.mxu1 %v1108_v9 }
  0x77   : > { %985 = vmatprep.subr.bf16.mxu1 %v1262_v0  ;;  %1000 = vmatpush3.bf16.msra.mxu0 %v1114_v15 }
  0x78   : > { %1001 = vmatprep.subr.bf16.mxu0 %v1262_v0 }
  0x7a   : > { %986 = vmatpush3.bf16.msra.mxu1 %v1109_v10 }
  0x7b   : > { %987 = vmatprep.subr.bf16.mxu1 %v1262_v0  ;;  %1002 = vmatpush3.bf16.msra.mxu0 %v1115_v16 }
  0x7c   : > { %1003 = vmatprep.subr.bf16.mxu0 %v1262_v0 }
  0x7e   : > { %988 = vmatpush3.bf16.msra.mxu1 %v1110_v11 }
  0x7f   : > { %989 = vmatprep.subr.bf16.mxu1 %v1262_v0  ;;  %1004 = vmatpush3.bf16.msra.mxu0 %v1116_v17 }
  0x80   : > { %1005 = vmatprep.subr.bf16.mxu0 %v1262_v0 }
  0x82   : > { %990 = vmatpush3.bf16.msra.mxu1 %v1111_v12 }
  0x83   : > { %991 = vmatprep.subr.bf16.mxu1 %v1262_v0  ;;  %1006 = vmatpush3.bf16.msra.mxu0 %v1117_v18 }
  0x84   : > { %1007 = vmatprep.subr.bf16.mxu0 %v1262_v0 }
  0x86   : > { %992 = vmatpush3.bf16.msra.mxu1 %v1112_v13 }
  0x87   : > { %1017 = vmatprep.subr.bf16.mxu1 %v1262_v0  ;;  %1008 = vmatpush3.bf16.msra.mxu0 %v1118_v19 }
  0x88   : > { %1009 = vmatprep.subr.bf16.mxu0 %v1262_v0 }
  0x8b   : > { %1010 = vmatpush3.bf16.msra.mxu0 %v1119_v30 }
  0x8c   : > { %1011 = vmatprep.subr.bf16.mxu0 %v1262_v0 }
  0x8f   : > { %1012 = vmatpush3.bf16.msra.mxu0 %v1120_v31 }
 0x144   : > { %v449_v21 = vpop.f32.mrb[0].mxu0 }
 0x145   : > { %v450_v22 = vadd.f32 %v905_v20, %v449_v21  ;;  %v975_v23 = vpop.f32.mrb[1].mxu0 }
 0x146   : > { %v452_v24 = vpop.f32.mrb[2].mxu0 }
 0x147   : > { %v453_v25 = vadd.f32 %v905_v20, %v452_v24  ;;  %v976_v26 = vpop.f32.mrb[3].mxu0  ;;  %v456_v27 = vmax.f32 %v450_v22, 0.0 }
 0x149   : > { %v457_v28 = vmax.f32 %v453_v25, 0.0 }
 0x14b   : > { %v475_v29 = vpack.c.bf16 %v457_v28, %v456_v27 }
 0x14d   : > { %994 = vmatmul.mubr.bf16.vlgmr.msra.gmra.mrb[0].mxu1 %v475_v29 }
 0x14e   : > { %1033 = vmatprep.mubr.msk.bf16.mxu1 %vm1263_vm0, %v1262_v0  ;;  %1018 = vmatpush3.bf16.msra.mxu1 %v1121_v32 }
 0x14f   : > { %1019 = vmatprep.subr.bf16.mxu1 %v1262_v0 }
 0x152   : > { %1020 = vmatpush3.bf16.msra.mxu1 %v1122_v33 }
 0x153   : > { %1021 = vmatprep.subr.bf16.mxu1 %v1262_v0 }
 0x156   : > { %1022 = vmatpush3.bf16.msra.mxu1 %v1123_v34 }
 0x157   : > { %1023 = vmatprep.subr.bf16.mxu1 %v1262_v0 }
 0x15a   : > { %1024 = vmatpush3.bf16.msra.mxu1 %v1124_v35 }
 0x15b   : > { %1025 = vmatprep.subr.bf16.mxu1 %v1262_v0 }
 0x15e   : > { %1026 = vmatpush3.bf16.msra.mxu1 %v1125_v36 }
 0x15f   : > { %1027 = vmatprep.subr.bf16.mxu1 %v1262_v0 }
 0x162   : > { %1028 = vmatpush3.bf16.msra.mxu1 %v1126_v37 }
 0x163   : > { %1029 = vmatprep.subr.bf16.mxu1 %v1262_v0 }
 0x166   : > { %1030 = vmatpush3.bf16.msra.mxu1 %v1127_v48 }
 0x167   : > { %1031 = vmatprep.subr.bf16.mxu1 %v1262_v0 }
 0x16a   : > { %1032 = vmatpush3.bf16.msra.mxu1 %v1128_v49 }
 0x220   : > { %v564_v39 = vpop.f32.mrb[0].mxu1 }
 0x221   : > { %v565_v40 = vadd.f32 %v909_v38, %v564_v39  ;;  %v995_v41 = vpop.f32.mrb[1].mxu1 }
 0x222   : > { %v567_v42 = vpop.f32.mrb[2].mxu1 }
 0x223   : > { %v568_v43 = vadd.f32 %v909_v38, %v567_v42  ;;  %v996_v44 = vpop.f32.mrb[3].mxu1  ;;  %v571_v45 = vmax.f32 %v565_v40, 0.0 }
 0x225   : > { %v572_v46 = vmax.f32 %v568_v43, 0.0 }
 0x227   : > { %v590_v47 = vpack.c.bf16 %v572_v46, %v571_v45 }
 0x229   : > { %1014 = vmatmul.mubr.bf16.vlgmr.msra.gmra.mrb[4].mxu0 %v590_v47 }
 0x2fc   : > { %v679_v51 = vpop.f32.mrb[4].mxu0 }
 0x2fd   : > { %v680_v52 = vadd.f32 %v918_v50, %v679_v51  ;;  %v1015_v53 = vpop.f32.mrb[5].mxu0 }
 0x2fe   : > { %v682_v54 = vpop.f32.mrb[6].mxu0 }
 0x2ff   : > { %v683_v55 = vadd.f32 %v918_v50, %v682_v54  ;;  %v1016_v56 = vpop.f32.mrb[7].mxu0  ;;  %v686_v57 = vmax.f32 %v680_v52, 0.0 }
 0x301   : > { %v687_v58 = vmax.f32 %v683_v55, 0.0 }
 0x303   : > { %v705_v59 = vpack.c.bf16 %v687_v58, %v686_v57 }
 0x305   : > { %1034 = vmatmul.mubr.bf16.vlgmr.msra.gmra.mrb[4].mxu1 %v705_v59 }
 0x3d8   : > { %v794_v61 = vpop.f32.mrb[4].mxu1 }
 0x3d9   : > { %v795_v62 = vadd.f32 %v927_v60, %v794_v61  ;;  %v1035_v63 = vpop.f32.mrb[5].mxu1 }
 0x3da   : > { %v797_v0 = vpop.f32.mrb[6].mxu1 }
 0x3db   : > { %802 = vst.msk [vmem:[%s382_s25] sm:$0xff] %vm801_vm2, %v795_v62  ;;  %v798_v1 = vadd.f32 %v927_v60, %v797_v0  ;;  %v1036_v2 = vpop.f32.mrb[7].mxu1 }
 0x3dd   : > { %803 = vst.msk [vmem:[%s382_s25 + $0x8] sm:$0xff] %vm801_vm2, %v798_v1 }
 0x3de PF: > { %p20_p6 = scmp.ge.s32.totalorder %s1410_s23, 4   ;;  %s1608_s30 = smov %s1245_s10 }
 0x3df   : > { %s1609_s10 = smov %s1249_s11  ;;  %s1610_s11 = smov %s1421_s26 }
 0x3e0   : > { %s1611_s12 = smov %s1410_s23  ;;  %22 = sbr.rel (!%p20_p6) target bundleno = 4 (0x4), region = 104 }
 0x3e7   :  { %826 = vsyncpa [#allocation3], 1 }
 0x3e8   :  { %828 = vsyncpa [#allocation3 + $0x1], 1 }
 0x3e9   :  { %829 = vsyncpa [#allocation5], 1 }

</bundles_post_ra>
